<compile_context>
chip_gen: v5e
topology: v5e:2x2
jax: 0.10.0
libtpu: 0.0.40
codegen_flags: <defaults>
</compile_context>

<pallas_src>
import math

import jax
import jax.numpy as jnp
from jax.experimental import pallas as pl
from jax.experimental.pallas import tpu as pltpu

# Per-tile byte budget: 2 MiB.  With double-buffered input + output tiles the
# pipeline uses ~8 MiB of VMEM -> safe on v5e/v6e (128 MiB) and v7x (64 MiB).
_MAX_TILE_BYTES = 2 * 1024 * 1024
_VMEM_LIMIT_BYTES = 32 * 1024 * 1024
_LANE = 128


def _copy_kernel(x_ref, o_ref):
    # Straight copy of the current tile (pure streaming, no compute).
    o_ref[...] = x_ref[...]


def _cost(n_elems, dtype):
    nbytes = int(n_elems) * jnp.dtype(dtype).itemsize
    return pl.CostEstimate(flops=0, transcendentals=0, bytes_accessed=2 * nbytes)


def _sublane_pack(dtype):
    # Sublane packing multiple: 8 for 32-bit, 16 for bf16/f16, 32 for int8/fp8.
    return max(8, 32 // jnp.dtype(dtype).itemsize)


def _pick_lanes(n):
    # Largest lane-dense width (multiple of 128) that divides n exactly.
    for lanes in (2048, 1024, 512, 256, 128):
        if n % lanes == 0:
            return lanes
    return None


def _pick_tile_rows(rows, lanes, dtype):
    # Largest divisor of `rows` that is a multiple of the sublane packing and
    # keeps the tile under the per-tile VMEM byte budget.  None if no such
    # divisor exists.
    pack = _sublane_pack(dtype)
    dsize = jnp.dtype(dtype).itemsize
    cap = max(pack, (_MAX_TILE_BYTES // (lanes * dsize)) // pack * pack)
    t = min(cap, (rows // pack) * pack)
    while t >= pack:
        if rows % t == 0:
            return t
        t -= pack
    return None


def _copy_single_block(x2d):
    """Whole-array single-block copy (block_shape == array shape is always legal).

    Only used for pieces whose footprint is at most ~_MAX_TILE_BYTES.
    """
    r, c = x2d.shape
    return pl.pallas_call(
        _copy_kernel,
        out_shape=jax.ShapeDtypeStruct((r, c), x2d.dtype),
        in_specs=[pl.BlockSpec((r, c), lambda: (0, 0))],
        out_specs=pl.BlockSpec((r, c), lambda: (0, 0)),
        compiler_params=pltpu.CompilerParams(vmem_limit_bytes=_VMEM_LIMIT_BYTES),
        cost_estimate=_cost(r * c, x2d.dtype),
    )(x2d)


def _copy_tiled(x2d, tile_rows):
    """Pipelined, lane-dense tiled copy.  rows must be a multiple of tile_rows."""
    rows, lanes = x2d.shape
    grid = (rows // tile_rows,)
    return pl.pallas_call(
        _copy_kernel,
        out_shape=jax.ShapeDtypeStruct((rows, lanes), x2d.dtype),
        grid_spec=pltpu.PrefetchScalarGridSpec(
            num_scalar_prefetch=0,
            grid=grid,
            in_specs=[pl.BlockSpec((tile_rows, lanes), lambda i: (i, 0))],
            out_specs=pl.BlockSpec((tile_rows, lanes), lambda i: (i, 0)),
        ),
        compiler_params=pltpu.CompilerParams(
            dimension_semantics=("parallel",),
            vmem_limit_bytes=_VMEM_LIMIT_BYTES,
        ),
        cost_estimate=_cost(rows * lanes, x2d.dtype),
    )(x2d)


def _pallas_copy_flat(flat):
    """Copy a flat (1-D) element stream through Pallas kernels."""
    n = flat.shape[0]
    if n == 0:
        return flat
    dtype = flat.dtype
    dsize = jnp.dtype(dtype).itemsize

    pieces = []

    lane_n = (n // _LANE) * _LANE  # lane-aligned prefix
    rem = n - lane_n               # < 128 trailing elements

    if lane_n > 0:
        lanes = _pick_lanes(lane_n)          # always >= 128 here
        rows = lane_n // lanes
        body = flat[:lane_n] if rem > 0 else flat
        x2d = body.reshape(rows, lanes)

        if rows * lanes * dsize <= _MAX_TILE_BYTES:
            # Small enough for a single full-array block (no pipelining needed).
            out2d = _copy_single_block(x2d)
        else:
            tile_rows = _pick_tile_rows(rows, lanes, dtype)
            if tile_rows is not None:
                # Exact grid: one pipelined call covering everything.
                out2d = _copy_tiled(x2d, tile_rows)
            else:
                # No convenient row divisor: tiled bulk + small row tail.
                pack = _sublane_pack(dtype)
                cap = max(pack, (_MAX_TILE_BYTES // (lanes * dsize)) // pack * pack)
                bulk_rows = (rows // cap) * cap
                outs = []
                if bulk_rows > 0:
                    outs.append(_copy_tiled(x2d[:bulk_rows], cap))
                if bulk_rows < rows:
                    outs.append(_copy_single_block(x2d[bulk_rows:]))
                out2d = outs[0] if len(outs) == 1 else jnp.concatenate(outs, axis=0)
        pieces.append(out2d.reshape(-1))

    if rem > 0:
        # Sub-128-element tail: a single tiny (1, rem) full-array block.
        tail2d = flat[lane_n:].reshape(1, rem)
        pieces.append(_copy_single_block(tail2d).reshape(-1))

    return pieces[0] if len(pieces) == 1 else jnp.concatenate(pieces)


def pallas_reshape(x, target_shape):
    """Equivalent of torch.Tensor.view(target_shape) with the data movement
    done in Pallas TPU copy kernels."""
    total = math.prod(x.shape)

    # Resolve a single -1 in the target shape (torch.view semantics).
    target_shape = list(target_shape)
    if -1 in target_shape:
        idx = target_shape.index(-1)
        known = math.prod(d for i, d in enumerate(target_shape) if i != idx)
        if known == 0 or total % known != 0:
            raise ValueError(
                f"cannot infer -1 dimension for view shape {tuple(target_shape)} "
                f"from {total} elements")
        target_shape[idx] = total // known
    target_shape = tuple(target_shape)

    if math.prod(target_shape) != total:
        raise ValueError(
            f"view shape {target_shape} is incompatible with {total} elements")

    flat = x.reshape(-1)
    flat_out = _pallas_copy_flat(flat)

    # Free metadata reshape to the requested view shape.
    return flat_out.reshape(target_shape)


class Reshape:
    """Mirror of the PyTorch module: Reshape(*shape)(x) == x.view(shape)."""

    def __init__(self, *args):
        self.shape = args

    def __call__(self, x):
        return pallas_reshape(x, self.shape)


if __name__ == "__main__":
    key = jax.random.PRNGKey(0)

    # Small NCHW input consistent with the module's typical use.
    x = jax.random.normal(key, (2, 4, 16, 16), dtype=jnp.float32)
    module = Reshape(2, -1)               # -> (2, 1024)
    out = jax.block_until_ready(module(x))
    ref = x.reshape(2, -1)
    assert out.shape == (2, 1024)
    assert out.dtype == x.dtype
    assert bool(jnp.array_equal(out, ref))

    # Secondary sanity check that exercises the tiled (pipelined) path.
    y = jnp.arange(16 * 64 * 32 * 32, dtype=jnp.float32).reshape(16, 64, 32, 32)
    out2 = jax.block_until_ready(Reshape(-1, 2048)(y))
    assert out2.shape == (512, 2048)
    assert bool(jnp.array_equal(out2, y.reshape(-1, 2048)))

    print("KERNEL_OK")
</pallas_src>

<mosaic_0001>
module attributes {stable_mosaic.version = 11 : i64} {
  func.func @_copy_kernel(%arg0: memref<1x2048xf32, #tpu.memory_space<vmem>>, %arg1: memref<1x2048xf32, #tpu.memory_space<vmem>>) attributes {dimension_semantics = [], scalar_prefetch = 0 : i64, scratch_operands = 0 : i64, tpu.core_type = #tpu.core_type<tc>} {
    %c0 = arith.constant 0 : index
    %c0_0 = arith.constant 0 : index
    %0 = vector.load %arg0[%c0, %c0_0] : memref<1x2048xf32, #tpu.memory_space<vmem>>, vector<1x2048xf32>
    %c0_1 = arith.constant 0 : index
    %c0_2 = arith.constant 0 : index
    %1 = vector.load %arg1[%c0_1, %c0_2] : memref<1x2048xf32, #tpu.memory_space<vmem>>, vector<1x2048xf32>
    tpu.vector_store %arg1[%c0_1, %c0_2], %0 {strides = array<i32>} : memref<1x2048xf32, #tpu.memory_space<vmem>>, vector<1x2048xf32>,
    return
  }
}

</mosaic_0001>

<bundles_post_ra>
// kernel: tpu_custom_call.1
= control target key start
LH: loop header
LB: loop body
LE: loop exit
PB: predicated region body
PF: predicated region fallthrough
CT: control target
= control target key end

     0   :  { %6 = vsyncpa [#allocation3], 0  ;;  %s116_s0 = inlined_call_operand.hbm [shape: f32[1,2048], index: 0, kind: input, shape index: {}]   ;;  %s117_s1 = inlined_call_operand.hbm [shape: f32[1,2048], index: 1, kind: output, shape index: {}]  }
   0x1   :  { %7 = vsyncpa [#allocation4], 0  ;;  %s13_s8 = sshll.u32 %s116_s0, 4  ;;  %s98_s9 = smov [#allocation2]   ;;  %s14_s8 = int_to_ptr.hbm [resolvable:$true] %s13_s8 }
   0x2   :  { %s15_s10 = sshll.u32 %s98_s9, 4  ;;  %s16_s10 = int_to_ptr.vmem [resolvable:$true] %s15_s10 }
   0x3   :  { %18 = dma.hbm_to_vmem [thread:$0]  %s14_s8, 256, %s16_s10, [#allocation3]  }
   0x4   :  { %94 = dma.done.wait [#allocation3], 256  }
   0x5   :  { %95 = vsyncadd [#allocation3], 4294967040  ;;  %s99_s11 = smov [#allocation5]   ;;  %s34_s15 = sshll.u32 %s117_s1, 4  ;;  %v23_v0 = vld [vmem:[#allocation2] sm:$0xff]  ;;  %v24_v1 = vld [vmem:[#allocation2 + $0x8] sm:$0xff]  ;;  %s35_s15 = int_to_ptr.hbm [resolvable:$true] %s34_s15 }
   0x6   :  { %s32_s12 = sshll.u32 %s99_s11, 4  ;;  %25 = vst [vmem:[#allocation5] sm:$0xff] %v23_v0  ;;  %s33_s12 = int_to_ptr.vmem [resolvable:$true] %s32_s12 }
   0x7   :  { %26 = vst [vmem:[#allocation5 + $0x8] sm:$0xff] %v24_v1 }
   0x8   :  { %37 = dma.vmem_to_hbm [thread:$0]  %s33_s12, 256, %s35_s15, [#allocation4]  }
   0x9   :  { %96 = dma.done.wait [#allocation4], 256  }
   0xa   :  { %97 = vsyncadd [#allocation4], 4294967040 }
   0xb   :  { %42 = vsyncpa [#allocation3], 1 }
   0xc   :  { %43 = vsyncpa [#allocation4], 1 }

</bundles_post_ra>
